<compile_context>
chip_gen: v7x
topology: tpu7x:2x2x1
jax: 0.10.0
libtpu: 0.0.40
codegen_flags: <defaults>
</compile_context>

<pallas_src>
import jax
import jax.numpy as jnp
from jax.experimental import pallas as pl
from jax.experimental.pallas import tpu as pltpu


def _round_up(a, b):
    return ((a + b - 1) // b) * b


def _vmem_limit_bytes():
    """Scoped-VMEM limit: v4/v5e/v6e (128 MiB physical) can afford ~100 MiB;
    stay at the 32 MiB default-safe value on v7x (64 MiB/TC) / unknown chips."""
    try:
        kind = jax.devices()[0].device_kind.lower()
    except Exception:
        kind = ""
    if any(t in kind for t in ("v4", "v5", "v6")):
        return 100 * 1024 * 1024
    return 32 * 1024 * 1024


def _pick_tm(dim_in, dim_hidden, dim_out_p, w_bytes, x_bytes, vmem_budget):
    """Largest row tile (multiple of 8, in [256, 1024]) whose working set fits
    the VMEM budget.  Weights/biases are counted x2 in case the pipeline
    double-buffers the constant-index blocks."""
    resident = 2 * ((dim_in * dim_hidden + dim_hidden * dim_hidden
                     + dim_hidden * dim_out_p) * w_bytes
                    + (2 * dim_hidden + dim_out_p) * 4)
    per_row = (2 * dim_in * x_bytes            # double-buffered x tile
               + 2 * dim_out_p * 4             # double-buffered f32 out tile
               + (2 * dim_hidden + dim_out_p) * 4)  # live f32 intermediates
    avail = vmem_budget - resident
    if avail < 256 * per_row:
        # Shrinking TM below 256 cannot fix weight residency -- the right fix
        # is a reduction grid axis over dim_hidden (K-tiling), not tiny tiles.
        # TODO(synk): add a K-tiled variant for dim_hidden too large for VMEM.
        raise ValueError(
            "MLP weights + a 256-row tile do not fit the VMEM budget "
            f"({vmem_budget} B); dim_hidden={dim_hidden} needs a K-tiled kernel.")
    return int(min(1024, avail // per_row) // 8 * 8)


def mlp_kernel(x_ref, w1_ref, b1_ref, w2_ref, b2_ref, w3_ref, b3_ref, o_ref):
    """One row tile of the MLP: (TM, dim_in) -> (TM, dim_out_padded)."""
    # Layer 1.  Cast the activation to the weight dtype (bf16 on the fast path)
    # right before the dot so the MXU runs its native bf16 path; accumulate f32.
    h = jnp.dot(x_ref[...].astype(w1_ref.dtype), w1_ref[...],
                preferred_element_type=jnp.float32)
    h = jnp.maximum(h + b1_ref[...], 0.0)      # f32 VPU work (v5e has no bf16 VPU)

    # Layer 2.
    h = jnp.dot(h.astype(w2_ref.dtype), w2_ref[...],
                preferred_element_type=jnp.float32)
    h = jnp.maximum(h + b2_ref[...], 0.0)

    # Output layer.  w3/b3 are pre-padded to a lane-dense width (multiple of
    # 128); padded columns carry a -1e30 f32 bias so they vanish under
    # log_softmax (exp(-1e30 - m) == 0, never NaN).
    logits = jnp.dot(h.astype(w3_ref.dtype), w3_ref[...],
                     preferred_element_type=jnp.float32)
    logits = logits + b3_ref[...]

    # Numerically stable log_softmax over the lane axis (XLU reduce + EUP exp).
    m = jnp.max(logits, axis=1, keepdims=True)
    shifted = logits - m
    lse = jnp.log(jnp.sum(jnp.exp(shifted), axis=1, keepdims=True))
    o_ref[...] = (shifted - lse).astype(o_ref.dtype)


def mlp_forward(x, params, tm=None, use_bf16=True):
    """MLP.forward: view(-1, dim_in) -> Linear -> ReLU -> Linear -> ReLU
    -> Linear -> log_softmax."""
    w1, b1, w2, b2, w3, b3 = params
    dim_in, dim_hidden = w1.shape
    dim_out = w3.shape[1]

    x2d = x.reshape(-1, dim_in)     # glue reshape in plain JAX
    n = x2d.shape[0]

    # Lane-dense output: pad dim_out up to a multiple of 128 so stores are
    # unmasked vst.  Pad weight columns are 0; pad biases are -1e30 kept in f32.
    dim_out_p = _round_up(dim_out, 128)
    pad = dim_out_p - dim_out
    w3p = jnp.pad(w3, ((0, 0), (0, pad)))
    b3p = jnp.pad(b3, (0, pad), constant_values=-1e30).astype(jnp.float32)

    # bf16 MXU operands (native matmul dtype on v5e/v6e/v7x); biases stay f32.
    w_dtype = jnp.bfloat16 if use_bf16 else w1.dtype
    w1c = w1.astype(w_dtype)
    w2c = w2.astype(w_dtype)
    w3c = w3p.astype(w_dtype)

    vmem_limit = _vmem_limit_bytes()
    if tm is None:
        tm = _pick_tm(dim_in, dim_hidden, dim_out_p,
                      w_bytes=jnp.dtype(w_dtype).itemsize,
                      x_bytes=jnp.dtype(x2d.dtype).itemsize,
                      vmem_budget=vmem_limit - (2 << 20))   # small headroom

    # Cap by the rows actually available (keep a multiple of 8 for sublanes).
    n8 = _round_up(n, 8)
    tm = min(tm, n8)
    # Give the grid >= 2 steps where possible so v7x's two TensorCores both get
    # work; on 1-TC chips this costs one extra ~0.35us grid step (noise).
    half = _round_up((n8 + 1) // 2, 8)
    if tm > half:
        tm = half

    grid = (pl.cdiv(n, tm),)

    out = pl.pallas_call(
        mlp_kernel,
        out_shape=jax.ShapeDtypeStruct((n, dim_out_p), jnp.float32),
        grid_spec=pltpu.PrefetchScalarGridSpec(
            num_scalar_prefetch=0,
            grid=grid,
            in_specs=[
                # x: row-tiled -> double-buffered DMA pipeline (the HBM-bound
                # stream); ragged last block is masked by Pallas.
                pl.BlockSpec((tm, dim_in), lambda i: (i, 0)),
                # weights / biases: constant index_map -> stay VMEM-resident
                pl.BlockSpec((dim_in, dim_hidden), lambda i: (0, 0)),
                pl.BlockSpec((1, dim_hidden), lambda i: (0, 0)),
                pl.BlockSpec((dim_hidden, dim_hidden), lambda i: (0, 0)),
                pl.BlockSpec((1, dim_hidden), lambda i: (0, 0)),
                pl.BlockSpec((dim_hidden, dim_out_p), lambda i: (0, 0)),
                pl.BlockSpec((1, dim_out_p), lambda i: (0, 0)),
            ],
            out_specs=pl.BlockSpec((tm, dim_out_p), lambda i: (i, 0)),
        ),
        compiler_params=pltpu.CompilerParams(
            dimension_semantics=("parallel",),   # megacore sharding on v7x
            vmem_limit_bytes=vmem_limit,
        ),
    )(x2d, w1c, b1.reshape(1, -1).astype(jnp.float32),
      w2c, b2.reshape(1, -1).astype(jnp.float32),
      w3c, b3p.reshape(1, -1))

    # NOTE: this column slice re-reads/re-writes the output slab; latency
    # sensitive callers can consume the lane-padded (N, dim_out_p) slab as-is.
    return out[:, :dim_out]


def init_mlp_params(dim_in, dim_hidden, dim_out, seed=0):
    """Deterministic init mirroring torch.nn.Linear: U(-1/sqrt(fan_in), 1/sqrt(fan_in)).
    Weights stored transposed as (fan_in, fan_out) so the kernel computes x @ W."""
    key = jax.random.PRNGKey(seed)
    keys = jax.random.split(key, 6)

    def linear(kw, kb, fan_in, fan_out):
        bound = 1.0 / (fan_in ** 0.5)
        w = jax.random.uniform(kw, (fan_in, fan_out), jnp.float32, -bound, bound)
        b = jax.random.uniform(kb, (fan_out,), jnp.float32, -bound, bound)
        return w, b

    w1, b1 = linear(keys[0], keys[1], dim_in, dim_hidden)
    w2, b2 = linear(keys[2], keys[3], dim_hidden, dim_hidden)
    w3, b3 = linear(keys[4], keys[5], dim_hidden, dim_out)
    return w1, b1, w2, b2, w3, b3


def mlp_ref(x, params, dim_in):
    w1, b1, w2, b2, w3, b3 = params
    h = x.reshape(-1, dim_in)
    h = jnp.maximum(h @ w1 + b1, 0.0)
    h = jnp.maximum(h @ w2 + b2, 0.0)
    return jax.nn.log_softmax(h @ w3 + b3, axis=1)


if __name__ == "__main__":
    # Input like an image batch: (N, C, H, W) = (16, 4, 8, 8) -> dim_in = 256.
    batch, C, H, W = 16, 4, 8, 8
    dim_in, dim_hidden, dim_out = C * H * W, 128, 10

    params = init_mlp_params(dim_in, dim_hidden, dim_out, seed=0)
    x = jax.random.normal(jax.random.PRNGKey(0), (batch, C, H, W), jnp.float32)

    ref = mlp_ref(x, params, dim_in)

    # Pure-f32 path: tight check against the f32 reference.
    out_f32 = mlp_forward(x, params, use_bf16=False)
    jax.block_until_ready(out_f32)
    assert out_f32.shape == (batch, dim_out), out_f32.shape
    assert jnp.allclose(out_f32, ref, atol=1e-3, rtol=1e-3), \
        float(jnp.max(jnp.abs(out_f32 - ref)))

    # Default fast path: bf16 MXU operands, f32 biases/accumulation/softmax.
    # Looser tolerance accounts for the intentional bf16 operand rounding.
    out = mlp_forward(x, params)
    jax.block_until_ready(out)
    assert out.shape == (batch, dim_out), out.shape
    assert jnp.allclose(out, ref, atol=3e-2, rtol=3e-2), \
        float(jnp.max(jnp.abs(out - ref)))

    print("KERNEL_OK")
</pallas_src>

<mosaic_0001>
module attributes {stable_mosaic.version = 11 : i64} {
  func.func @mlp_kernel(%arg0: i32, %arg1: memref<8x256xf32, #tpu.memory_space<vmem>>, %arg2: memref<256x128xf32, #tpu.memory_space<vmem>>, %arg3: memref<1x128xf32, #tpu.memory_space<vmem>>, %arg4: memref<128x128xf32, #tpu.memory_space<vmem>>, %arg5: memref<1x128xf32, #tpu.memory_space<vmem>>, %arg6: memref<128x128xf32, #tpu.memory_space<vmem>>, %arg7: memref<1x128xf32, #tpu.memory_space<vmem>>, %arg8: memref<8x128xf32, #tpu.memory_space<vmem>>) attributes {dimension_semantics = [#tpu.dimension_semantics<parallel>], iteration_bounds = array<i64: 2>, scalar_prefetch = 0 : i64, scratch_operands = 0 : i64, tpu.core_type = #tpu.core_type<tc>, window_params = [{transform_indices = @transform_0, window_bounds = array<i64: 8, 256>}, {pipeline_mode = #tpu.pipeline_mode<synchronous>, transform_indices = @transform_1, window_bounds = array<i64: 256, 128>}, {pipeline_mode = #tpu.pipeline_mode<synchronous>, transform_indices = @transform_2, window_bounds = array<i64: 1, 128>}, {pipeline_mode = #tpu.pipeline_mode<synchronous>, transform_indices = @transform_3, window_bounds = array<i64: 128, 128>}, {pipeline_mode = #tpu.pipeline_mode<synchronous>, transform_indices = @transform_4, window_bounds = array<i64: 1, 128>}, {pipeline_mode = #tpu.pipeline_mode<synchronous>, transform_indices = @transform_5, window_bounds = array<i64: 128, 128>}, {pipeline_mode = #tpu.pipeline_mode<synchronous>, transform_indices = @transform_6, window_bounds = array<i64: 1, 128>}, {transform_indices = @transform_7, window_bounds = array<i64: 8, 128>}]} {
    %c0 = arith.constant 0 : index
    %c0_0 = arith.constant 0 : index
    %0 = vector.load %arg1[%c0, %c0_0] : memref<8x256xf32, #tpu.memory_space<vmem>>, vector<8x256xf32>
    %c0_1 = arith.constant 0 : index
    %c0_2 = arith.constant 0 : index
    %1 = vector.load %arg2[%c0_1, %c0_2] : memref<256x128xf32, #tpu.memory_space<vmem>>, vector<256x128xf32>
    %cst = arith.constant dense<0.000000e+00> : vector<8x128xf32>
    %2 = tpu.matmul %0, %1, %cst {dimension_numbers = #tpu.dot_dimension_numbers<[1], [0], [0], [1], [0, 0, 1, 1], [], []>} : vector<8x256xf32>, vector<256x128xf32>, vector<8x128xf32> -> vector<8x128xf32>
    %c0_3 = arith.constant 0 : index
    %c0_4 = arith.constant 0 : index
    %3 = vector.load %arg3[%c0_3, %c0_4] : memref<1x128xf32, #tpu.memory_space<vmem>>, vector<1x128xf32>
    %4 = vector.broadcast %3 : vector<1x128xf32> to vector<8x128xf32>
    %5 = arith.addf %2, %4 : vector<8x128xf32>
    %cst_5 = arith.constant 0.000000e+00 : f32
    %6 = vector.broadcast %cst_5 : f32 to vector<8x128xf32>
    %7 = arith.maximumf %5, %6 : vector<8x128xf32>
    %c0_6 = arith.constant 0 : index
    %c0_7 = arith.constant 0 : index
    %8 = vector.load %arg4[%c0_6, %c0_7] : memref<128x128xf32, #tpu.memory_space<vmem>>, vector<128x128xf32>
    %cst_8 = arith.constant dense<0.000000e+00> : vector<8x128xf32>
    %9 = tpu.matmul %7, %8, %cst_8 {dimension_numbers = #tpu.dot_dimension_numbers<[1], [0], [0], [1], [0, 0, 1, 1], [], []>} : vector<8x128xf32>, vector<128x128xf32>, vector<8x128xf32> -> vector<8x128xf32>
    %c0_9 = arith.constant 0 : index
    %c0_10 = arith.constant 0 : index
    %10 = vector.load %arg5[%c0_9, %c0_10] : memref<1x128xf32, #tpu.memory_space<vmem>>, vector<1x128xf32>
    %11 = vector.broadcast %10 : vector<1x128xf32> to vector<8x128xf32>
    %12 = arith.addf %9, %11 : vector<8x128xf32>
    %cst_11 = arith.constant 0.000000e+00 : f32
    %13 = vector.broadcast %cst_11 : f32 to vector<8x128xf32>
    %14 = arith.maximumf %12, %13 : vector<8x128xf32>
    %c0_12 = arith.constant 0 : index
    %c0_13 = arith.constant 0 : index
    %15 = vector.load %arg6[%c0_12, %c0_13] : memref<128x128xf32, #tpu.memory_space<vmem>>, vector<128x128xf32>
    %cst_14 = arith.constant dense<0.000000e+00> : vector<8x128xf32>
    %16 = tpu.matmul %14, %15, %cst_14 {dimension_numbers = #tpu.dot_dimension_numbers<[1], [0], [0], [1], [0, 0, 1, 1], [], []>} : vector<8x128xf32>, vector<128x128xf32>, vector<8x128xf32> -> vector<8x128xf32>
    %c0_15 = arith.constant 0 : index
    %c0_16 = arith.constant 0 : index
    %17 = vector.load %arg7[%c0_15, %c0_16] : memref<1x128xf32, #tpu.memory_space<vmem>>, vector<1x128xf32>
    %18 = vector.broadcast %17 : vector<1x128xf32> to vector<8x128xf32>
    %19 = arith.addf %16, %18 : vector<8x128xf32>
    %cst_17 = arith.constant dense<0xFF800000> : vector<8xf32>
    %20 = vector.multi_reduction <maximumf>, %19, %cst_17 [1] : vector<8x128xf32> to vector<8xf32>
    %21 = vector.shape_cast %20 : vector<8xf32> to vector<8x1xf32>
    %22 = vector.broadcast %21 : vector<8x1xf32> to vector<8x128xf32>
    %23 = arith.subf %19, %22 : vector<8x128xf32>
    %24 = math.exp %23 : vector<8x128xf32>
    %cst_18 = arith.constant dense<0.000000e+00> : vector<8xf32>
    %25 = vector.multi_reduction <add>, %24, %cst_18 [1] : vector<8x128xf32> to vector<8xf32>
    %26 = vector.shape_cast %25 : vector<8xf32> to vector<8x1xf32>
    %27 = math.log %26 : vector<8x1xf32>
    %28 = vector.broadcast %27 : vector<8x1xf32> to vector<8x128xf32>
    %29 = arith.subf %23, %28 : vector<8x128xf32>
    %c0_19 = arith.constant 0 : index
    %c0_20 = arith.constant 0 : index
    %30 = vector.load %arg8[%c0_19, %c0_20] : memref<8x128xf32, #tpu.memory_space<vmem>>, vector<8x128xf32>
    tpu.vector_store %arg8[%c0_19, %c0_20], %29 {strides = array<i32>} : memref<8x128xf32, #tpu.memory_space<vmem>>, vector<8x128xf32>,
    return
  }
  func.func @transform_0(%arg0: i32) -> (i32, i32) {
    %c0_i32 = arith.constant 0 : i32
    %c0_i32_0 = arith.constant 0 : i32
    return %arg0, %c0_i32 : i32, i32
  }
  func.func @transform_1(%arg0: i32) -> (i32, i32) {
    %c0_i32 = arith.constant 0 : i32
    %c0_i32_0 = arith.constant 0 : i32
    %c0_i32_1 = arith.constant 0 : i32
    return %c0_i32, %c0_i32_0 : i32, i32
  }
  func.func @transform_2(%arg0: i32) -> (i32, i32) {
    %c0_i32 = arith.constant 0 : i32
    %c0_i32_0 = arith.constant 0 : i32
    %c0_i32_1 = arith.constant 0 : i32
    return %c0_i32, %c0_i32_0 : i32, i32
  }
  func.func @transform_3(%arg0: i32) -> (i32, i32) {
    %c0_i32 = arith.constant 0 : i32
    %c0_i32_0 = arith.constant 0 : i32
    %c0_i32_1 = arith.constant 0 : i32
    return %c0_i32, %c0_i32_0 : i32, i32
  }
  func.func @transform_4(%arg0: i32) -> (i32, i32) {
    %c0_i32 = arith.constant 0 : i32
    %c0_i32_0 = arith.constant 0 : i32
    %c0_i32_1 = arith.constant 0 : i32
    return %c0_i32, %c0_i32_0 : i32, i32
  }
  func.func @transform_5(%arg0: i32) -> (i32, i32) {
    %c0_i32 = arith.constant 0 : i32
    %c0_i32_0 = arith.constant 0 : i32
    %c0_i32_1 = arith.constant 0 : i32
    return %c0_i32, %c0_i32_0 : i32, i32
  }
  func.func @transform_6(%arg0: i32) -> (i32, i32) {
    %c0_i32 = arith.constant 0 : i32
    %c0_i32_0 = arith.constant 0 : i32
    %c0_i32_1 = arith.constant 0 : i32
    return %c0_i32, %c0_i32_0 : i32, i32
  }
  func.func @transform_7(%arg0: i32) -> (i32, i32) {
    %c0_i32 = arith.constant 0 : i32
    %c0_i32_0 = arith.constant 0 : i32
    return %arg0, %c0_i32 : i32, i32
  }
}

</mosaic_0001>

<bundles_post_ra>
// kernel: tpu_custom_call.1
= control target key start
LH: loop header
LB: loop body
LE: loop exit
PB: predicated region body
PF: predicated region fallthrough
CT: control target
= control target key end

     0   :  { %12 = vsyncpa [#allocation3], 0  ;;  %s1623_s0 = inlined_call_operand.hbm [shape: f32[16,256], index: 0, kind: input, shape index: {}]   ;;  %s1624_s1 = inlined_call_operand.hbm [shape: f32[256,128], index: 1, kind: input, shape index: {}]   ;;  %s1625_s2 = inlined_call_operand.vmem [shape: f32[1,128], index: 2, kind: input, shape index: {}]   ;;  %s1626_s3 = inlined_call_operand.hbm [shape: f32[128,128], index: 3, kind: input, shape index: {}]   ;;  %s1627_s4 = inlined_call_operand.vmem [shape: f32[1,128], index: 4, kind: input, shape index: {}]   ;;  %s1628_s5 = inlined_call_operand.hbm [shape: f32[128,128], index: 5, kind: input, shape index: {}]   ;;  %s1629_s6 = inlined_call_operand.vmem [shape: f32[1,128], index: 6, kind: input, shape index: {}]   ;;  %s1630_s7 = inlined_call_operand.hbm [shape: f32[16,128], index: 7, kind: output, shape index: {}]  }
   0x1   :  { %14 = vsyncpa [#allocation3 + $0x1], 0 }
   0x2   :  { %15 = vsyncpa [#allocation6], 0 }
   0x3   :  { %16 = vsyncpa [#allocation9], 0 }
   0x4   :  { %17 = vsyncpa [#allocation4], 0 }
   0x5   :  { %19 = vsyncpa [#allocation4 + $0x1], 0  ;;  %s1330_s24 = smov 0   ;;  %s1332_s25 = smov 0  }
   0x6   :  { %s1334_s26 = smov 0   ;;  %s1336_s27 = smov 0  }
   0x7 LB: > { %s1351_s28 = sadd.s32 4294967295, %s1278_s27   ;;  %s762_s29 = sadd.s32 4294967294, %s1278_s27   ;;  %s1278_s27 = sphi %s1336_s27, %s1656_s27   ;;  %s1274_s26 = sphi %s1334_s26, %s1655_s26   ;;  %s1270_s25 = sphi %s1332_s25, %s1654_s25   ;;  %s1266_s24 = sphi %s1330_s24, %s1653_s24  }
   0x8   : > { %p45_p0 = scmp.ne.s32.totalorder %s1270_s25, %s1266_s24  ;;  %p1631_p1 = scmp.eq.s32.totalorder %s1351_s28, 0 }
   0x9   : > { %p201_p3 = scmp.eq.s32.totalorder %s762_s29, 1  ;;  %p763_p5 = scmp.ge.s32.totalorder %s1278_s27, 1 }
   0xa   : > { %p1360_p4 = por %p1631_p1, %p45_p0  ;;  %p208_p7 = scmp.lt.s32.totalorder %s1278_s27, 3 }
   0xb   : > { %p1365_p6 = por %p201_p3, %p45_p0  ;;  %s1280_s10 = smov [#allocation5]  }
   0xc   : > { %s1635_s30 = scalar_select %p1360_p4, 1, 0 }
   0xd   : > { %s1636_s8 = scalar_select %p1365_p6, 1, 0 }
   0xe   : > { %p1370_p8 = pnand %p763_p5, %p208_p7  ;;  %s220_s11 = sshll.u32 %s1280_s10, 4  ;;  %s1374_s11 = int_to_ptr.vmem [resolvable:$true] %s220_s11 }
   0xf   : > { %1637 = sst [smem:[#allocation15_spill]] %s1636_s8  ;;  %s1281_s13 = smov [#allocation7]  }
  0x10   : > { %s1638_s9 = scalar_select %p1370_p8, 1, 0 }
  0x11   : > { %p1020_p9 = pneg %p1370_p8  ;;  %s236_s14 = sshll.u32 %s1281_s13, 4  ;;  %s1385_s14 = int_to_ptr.vmem [resolvable:$true] %s236_s14 }
  0x12   : > { %s1282_s15 = smov [#allocation8]   ;;  %s1090_s19 = scalar_lea.hbm %s1624_s1, 4096 }
  0x13   : > { %p1381_p11 = pnand %p1020_p9, %p1631_p1  ;;  %s1387_s16 = sshll.u32 %s1282_s15, 4  ;;  %s253_s16 = int_to_ptr.vmem [resolvable:$true] %s1387_s16 }
  0x14   : > { %p1091_p12 = scmp.ne.s32.totalorder %s1624_s1, %s1090_s19  ;;  %p1097_p5 = scmp.lt.u32.totalorder %s1090_s19, %s1624_s1 }
  0x15   : > { %p1397_p13 = pneg %p1381_p11 }
  0x17   : > { %p1093_p0 = pnand %p1397_p13, %p1091_p12 }
  0x19   : > { %p1094_p3 = pneg %p1093_p0 }
  0x1b   : > { %p1099_p7 = pnand %p1097_p5, %p1094_p3 }
  0x1d   : > { %1102 = shalt.err (!%p1099_p7)
}
  0x1e   : > { %s1103_s10 = scalar_lea.vmem %s1374_s11, 4096  ;;  %p1111_p2 = scmp.lt.s32.totalorder %s1374_s11, %s1374_s11 }
  0x1f   : > { %p1104_p9 = scmp.ne.s32.totalorder %s1374_s11, %s1103_s10  ;;  %p1112_p6 = scmp.lt.s32.totalorder %s1103_s10, %s1103_s10 }
  0x21   : > { %p1106_p10 = pnand %p1104_p9, %p1397_p13  ;;  %p1113_p12 = por %p1112_p6, %p1111_p2 }
  0x23   : > { %p1107_p1 = pneg %p1106_p10 }
  0x25   : > { %p1114_p0 = pnand %p1113_p12, %p1107_p1 }
  0x27   : > { %1117 = shalt.err (!%p1114_p0)
}
  0x28   : > { %s1283_s13 = smov 128   ;;  %s1284_s15 = smov 8  }
  0x29   : > { %1023 = dma.hbm_to_vmem [thread:$0]  (!%p1381_p11), %s1624_s1, 4096, %s1374_s11, [#allocation6], %s1283_s13, %s1283_s13, %s1284_s15  }
  0x2a   : > { %s1118_s21 = scalar_lea.hbm %s1626_s3, 2048 }
  0x2b   : > { %p1119_p1 = scmp.ne.s32.totalorder %s1626_s3, %s1118_s21  ;;  %p1125_p10 = scmp.lt.u32.totalorder %s1118_s21, %s1626_s3 }
  0x2d   : > { %p1121_p2 = pnand %p1119_p1, %p1397_p13 }
  0x2f   : > { %p1122_p6 = pneg %p1121_p2 }
  0x31   : > { %p1127_p3 = pnand %p1125_p10, %p1122_p6 }
  0x33   : > { %1130 = shalt.err (!%p1127_p3)
}
  0x34   : > { %s1131_s11 = scalar_lea.vmem %s1385_s14, 2048  ;;  %p1139_p12 = scmp.lt.s32.totalorder %s1385_s14, %s1385_s14 }
  0x35   : > { %p1132_p5 = scmp.ne.s32.totalorder %s1385_s14, %s1131_s11  ;;  %p1140_p0 = scmp.lt.s32.totalorder %s1131_s11, %s1131_s11 }
  0x37   : > { %p1134_p7 = pnand %p1132_p5, %p1397_p13  ;;  %p1141_p1 = por %p1140_p0, %p1139_p12 }
  0x39   : > { %p1135_p9 = pneg %p1134_p7 }
  0x3b   : > { %p1142_p2 = pnand %p1141_p1, %p1135_p9 }
  0x3d   : > { %1145 = shalt.err (!%p1142_p2)
}
  0x3e   : > { %1026 = dma.hbm_to_vmem [thread:$0]  (!%p1381_p11), %s1626_s3, 2048, %s1385_s14, [#allocation6], %s1283_s13, %s1283_s13, %s1284_s15  }
  0x3f   : > { %s1146_s20 = scalar_lea.hbm %s1628_s5, 2048 }
  0x40   : > { %p1147_p6 = scmp.ne.s32.totalorder %s1628_s5, %s1146_s20  ;;  %p1153_p5 = scmp.lt.u32.totalorder %s1146_s20, %s1628_s5 }
  0x42   : > { %p1149_p10 = pnand %p1147_p6, %p1397_p13 }
  0x44   : > { %p1150_p3 = pneg %p1149_p10 }
  0x46   : > { %p1155_p7 = pnand %p1153_p5, %p1150_p3 }
  0x48   : > { %1158 = shalt.err (!%p1155_p7)
}
  0x49   : > { %s1159_s11 = scalar_lea.vmem %s253_s16, 2048  ;;  %p1167_p1 = scmp.lt.s32.totalorder %s253_s16, %s253_s16 }
  0x4a   : > { %p1160_p9 = scmp.ne.s32.totalorder %s253_s16, %s1159_s11  ;;  %p1168_p2 = scmp.lt.s32.totalorder %s1159_s11, %s1159_s11 }
  0x4c   : > { %p1162_p12 = pnand %p1160_p9, %p1397_p13  ;;  %p1169_p4 = por %p1168_p2, %p1167_p1 }
  0x4e   : > { %p1163_p0 = pneg %p1162_p12 }
  0x50   : > { %p1170_p8 = pnand %p1169_p4, %p1163_p0 }
  0x52   : > { %1173 = shalt.err (!%p1170_p8)
}
  0x53   : > { %1029 = dma.hbm_to_vmem [thread:$0]  (!%p1381_p11), %s1628_s5, 2048, %s253_s16, [#allocation9], %s1283_s13, %s1283_s13, %s1284_s15  }
  0x54   : > { %s1470_s22 = sadd.s32 1, %s1278_s27   ;;  %s32_s17 = sadd.s32 1, %s1274_s26 }
  0x55   : > { %s29_s12 = ssub.s32 %s1278_s27, %s1470_s22  ;;  %p39_p8 = scmp.ne.s32.totalorder %s1274_s26, %s1270_s25 }
  0x56   : > { %p30_p4 = scmp.eq.s32.totalorder %s29_s12, 0  ;;  %p40_p13 = scmp.eq.s32.totalorder %s1278_s27, 0 }
  0x57   : > { %p1041_p6 = scmp.lt.s32.totalorder %s1278_s27, 2  ;;  %p1641_p3 = scmp.eq.s32.totalorder %s1351_s28, 1 }
  0x58   : > { %s1480_s18 = scalar_select %p30_p4, %s1274_s26, %s32_s17  }
  0x59   : > { %p41_p10 = por %p40_p13, %p39_p8  ;;  %p1484_p5 = por %p1641_p3, %p39_p8 }
  0x5a   : > { %s269_s20 = sand.u32 1, %s1274_s26   ;;  %s784_s21 = sshll.u32 %s1278_s27, 8 }
  0x5b   : > { %s768_s16 = sshll.u32 %s269_s20, 4  ;;  %s1493_s23 = scalar_lea.hbm %s1623_s0, %s784_s21 }
  0x5c   : > { %s273_s29 = scalar_lea.vmem [#allocation2], %s768_s16  ;;  %p1495_p11 = pnand %p1041_p6, %p41_p10 }
  0x5d   : > { %s281_s10 = sshll.u32 %s273_s29, 4  ;;  %s270_s14 = scalar_lea.sflag [#allocation3], %s269_s20  ;;  %s1499_s10 = int_to_ptr.vmem [resolvable:$true] %s281_s10 }
  0x5e   : > { %s1174_s8 = scalar_lea.hbm %s1493_s23, 256  ;;  %p1176_p9 = pneg %p1495_p11 }
  0x5f   : > { %p1175_p7 = scmp.ne.s32.totalorder %s1493_s23, %s1174_s8  ;;  %s1179_s21 = scalar_lea.hbm %s1623_s0, 512 }
  0x60   : > { %p1180_p1 = scmp.lt.u32.totalorder %s1493_s23, %s1623_s0  ;;  %p1181_p2 = scmp.lt.u32.totalorder %s1179_s21, %s1174_s8 }
  0x61   : > { %p1177_p12 = pnand %p1176_p9, %p1175_p7  ;;  %p1183_p8 = scmp.lt.u32.totalorder %s1174_s8, %s1493_s23 }
  0x62   : > { %p1182_p4 = por %p1181_p2, %p1180_p1 }
  0x63   : > { %p1178_p0 = pneg %p1177_p12 }
  0x64   : > { %p1184_p13 = por %p1183_p8, %p1182_p4 }
  0x66   : > { %p1185_p6 = pnand %p1184_p13, %p1178_p0 }
  0x68   : > { %1188 = shalt.err (!%p1185_p6)
}
  0x69   : > { %s1189_s20 = scalar_lea.vmem %s1499_s10, 256  ;;  %s1285_s15 = smov [#allocation2]  }
  0x6a   : > { %p1190_p10 = scmp.ne.s32.totalorder %s1499_s10, %s1189_s20  ;;  %s1194_s29 = sshll.u32 %s1285_s15, 4  ;;  %s1195_s29 = int_to_ptr.vmem [resolvable:$false] %s1194_s29 }
  0x6b   : > { %s1196_s12 = scalar_lea.vmem %s1195_s29, 512  ;;  %p1197_p12 = scmp.lt.s32.totalorder %s1499_s10, %s1195_s29 }
  0x6c   : > { %p1192_p3 = pnand %p1190_p10, %p1176_p9  ;;  %p1198_p1 = scmp.lt.s32.totalorder %s1196_s12, %s1189_s20 }
  0x6e   : > { %p1193_p7 = pneg %p1192_p3  ;;  %p1199_p2 = por %p1198_p1, %p1197_p12 }
  0x70   : > { %p1200_p4 = pnand %p1199_p2, %p1193_p7 }
  0x72   : > { %1203 = shalt.err (!%p1200_p4)
}
  0x73   : > { %1033 = dma.hbm_to_vmem [thread:$0]  (!%p1495_p11), %s1493_s23, 256, %s1499_s10, %s270_s14  }
  0x74   : > { %p1644_p0 = scmp.ne.s32.totalorder %s1638_s9, 0 }
  0x75   : > { %s1529_s8 = sand.u32 (!%p1644_p0), 1, %s1270_s25   ;;  %p1645_p9 = scmp.ne.s32.totalorder (!%p1644_p0), %s1635_s30, 0 }
  0x76   : > { %290 = sbr.rel (%p1644_p0) target bundleno = 1145 (0x479), region = 48  ;;  %s772_s17 = sshll.u32 (!%p1644_p0), %s1529_s8, 4 }
  0x77   : > { %s293_s21 = scalar_lea.sflag (!%p1644_p0), [#allocation3], %s1529_s8  ;;  %s1533_s16 = scalar_lea.vmem (!%p1644_p0), [#allocation2], %s772_s17 }
  0x7d   : > { %1249 = dma.done.wait (%p1645_p9), %s293_s21, 256  }
  0x7e   : > { %1251 = vsyncadd (%p1645_p9), %s293_s21, 4294967040  ;;  %p1646_p11 = scmp.eq.s32.totalorder %s1351_s28, 0 }
  0x80   : > { %1253 = dma.done.wait (%p1646_p11), [#allocation6], 6144   ;;  %p1647_p8 = pmov %p1646_p11 }
  0x82   : > { %1255 = vsyncadd (%p1647_p8), [#allocation6], 4294961152  ;;  %p1648_p13 = pmov %p1647_p8 }
  0x83   : > { %p1649_p6 = pmov %p1647_p8 }
  0x84   : > { %1257 = dma.done.wait (%p1648_p13), [#allocation9], 2048  }
  0x85   : > { %1259 = vsyncadd (%p1649_p6), [#allocation9], 4294965248  ;;  %v1286_v0 = vmov 0.0|0.0   ;;  %v357_v1 = vld [vmem:[#allocation5 + $0x80] sm:$0xff]  ;;  %v358_v2 = vld [vmem:[#allocation5 + $0x88] sm:$0xff]  ;;  %vm1287_vm0 = vmmov 0  }
  0x86   : > { %956 = vmatprep.subr.bf16.mxu1 %v1286_v0  ;;  %v341_v3 = vld [vmem:[#allocation5] sm:$0xff]  ;;  %v924_v4 = vpack.c.bf16 %v358_v2, %v357_v1  ;;  %v342_v5 = vld [vmem:[#allocation5 + $0x8] sm:$0xff]  ;;  %v359_v6 = vld [vmem:[#allocation5 + $0x90] sm:$0xff]  ;;  %s776_s13 = sshll.u32 %s1529_s8, 3  ;;  %s781_s20 = sshll.u32 %s1351_s28, 7 }
  0x87   : > { %v360_v7 = vld [vmem:[#allocation5 + $0x98] sm:$0xff]  ;;  %v926_v8 = vpack.c.bf16 %v342_v5, %v341_v3  ;;  %v343_v10 = vld [vmem:[#allocation5 + $0x10] sm:$0xff]  ;;  %v361_v12 = vld [vmem:[#allocation5 + $0xa0] sm:$0xff]  ;;  %s338_s15 = scalar_lea.vmem [#allocation10], %s776_s13  ;;  %s1579_s21 = scalar_lea.hbm %s1630_s7, %s781_s20 }
  0x88   : > { %v928_v9 = vpack.c.bf16 %v360_v7, %v359_v6  ;;  %v344_v11 = vld [vmem:[#allocation5 + $0x18] sm:$0xff]  ;;  %925 = vmatprep.subr.bf16.mxu0 %v924_v4  ;;  %v362_v13 = vld [vmem:[#allocation5 + $0xa8] sm:$0xff]  ;;  %v345_v16 = vld [vmem:[#allocation5 + $0x20] sm:$0xff]  ;;  %s663_s29 = sshll.u32 %s338_s15, 4  ;;  %s1289_s28 = smov [#allocation10]   ;;  %s1581_s29 = int_to_ptr.vmem [resolvable:$true] %s663_s29 }
  0x89   : > { %927 = vmatpush3.bf16.msra.mxu0 %v926_v8  ;;  %v930_v14 = vpack.c.bf16 %v344_v11, %v343_v10  ;;  %v932_v15 = vpack.c.bf16 %v362_v13, %v361_v12  ;;  %v346_v17 = vld [vmem:[#allocation5 + $0x28] sm:$0xff]  ;;  %v363_v18 = vld [vmem:[#allocation5 + $0xb0] sm:$0xff]  ;;  %v364_v19 = vld [vmem:[#allocation5 + $0xb8] sm:$0xff]  ;;  %v1288_v12 = vmov 0.0   ;;  %s1204_s30 = scalar_lea.vmem %s1581_s29, 128  ;;  %s1208_s9 = sshll.u32 %s1289_s28, 4  ;;  %s1209_s9 = int_to_ptr.vmem [resolvable:$false] %s1208_s9 }
  0x8a   : > { %929 = vmatprep.subr.bf16.mxu0 %v928_v9  ;;  %v934_v20 = vpack.c.bf16 %v346_v17, %v345_v16  ;;  %v936_v21 = vpack.c.bf16 %v364_v19, %v363_v18  ;;  %v347_v22 = vld [vmem:[#allocation5 + $0x30] sm:$0xff]  ;;  %v348_v23 = vld [vmem:[#allocation5 + $0x38] sm:$0xff]  ;;  %v365_v24 = vld [vmem:[#allocation5 + $0xc0] sm:$0xff]  ;;  %886 = vmatprep.mubr.msk.f32.mxu1 %vm1287_vm0, %v1288_v12  ;;  %p1205_p10 = scmp.ne.s32.totalorder %s1581_s29, %s1204_s30  ;;  %s1210_s23 = scalar_lea.vmem %s1209_s9, 256 }
  0x8b   : > { %v366_v25 = vld [vmem:[#allocation5 + $0xc8] sm:$0xff]  ;;  %v451_v27 = vld [vmem:[#allocation7] sm:$0xff]  ;;  %v938_v29 = vpack.c.bf16 %v348_v23, %v347_v22  ;;  %v453_v31 = vld [vmem:[#allocation7 + $0x10] sm:$0xff]  ;;  %p1211_p12 = scmp.lt.s32.totalorder %s1581_s29, %s1209_s9  ;;  %p1212_p1 = scmp.lt.s32.totalorder %s1210_s23, %s1204_s30 }
  0x8c   : > { %v340_v26 = vld [vmem:[%s1533_s16 + $0x8] sm:$0xff]  ;;  %v940_v33 = vpack.c.bf16 %v366_v25, %v365_v24  ;;  %v349_v34 = vld [vmem:[#allocation5 + $0x40] sm:$0xff]  ;;  %v367_v36 = vld [vmem:[#allocation5 + $0xd0] sm:$0xff]  ;;  %p1206_p3 = pnand %p1205_p10, %p1484_p5 }
  0x8d   : > { %931 = vmatpush3.bf16.msra.mxu0 %v930_v14  ;;  %444 = vmatprep.mubr.f32.mxu0 %v340_v26  ;;  %v452_v28 = vld [vmem:[#allocation7 + $0x8] sm:$0xff]  ;;  %v454_v32 = vld [vmem:[#allocation7 + $0x18] sm:$0xff]  ;;  %v455_v39 = vld [vmem:[#allocation7 + $0x20] sm:$0xff]  ;;  %p1213_p2 = por %p1212_p1, %p1211_p12 }
  0x8e   : > { %933 = vmatprep.subr.bf16.mxu0 %v932_v15  ;;  %v957_v30 = vpack.c.bf16 %v452_v28, %v451_v27  ;;  %v350_v35 = vld [vmem:[#allocation5 + $0x48] sm:$0xff]  ;;  %v368_v37 = vld [vmem:[#allocation5 + $0xd8] sm:$0xff]  ;;  %v960_v38 = vpack.c.bf16 %v454_v32, %v453_v31  ;;  %v351_v43 = vld [vmem:[#allocation5 + $0x50] sm:$0xff]  ;;  %p1207_p7 = pneg %p1206_p3 }
  0x8f   : > { %v456_v40 = vld [vmem:[#allocation7 + $0x28] sm:$0xff]  ;;  %v942_v41 = vpack.c.bf16 %v350_v35, %v349_v34  ;;  %v944_v42 = vpack.c.bf16 %v368_v37, %v367_v36  ;;  %v352_v44 = vld [vmem:[#allocation5 + $0x58] sm:$0xff]  ;;  %v369_v45 = vld [vmem:[#allocation5 + $0xe0] sm:$0xff] }
  0x90   : > { %958 = vmatpush3.bf16.msra.mxu1 %v957_v30  ;;  %v370_v46 = vld [vmem:[#allocation5 + $0xe8] sm:$0xff]  ;;  %v963_v47 = vpack.c.bf16 %v456_v40, %v455_v39  ;;  %v457_v48 = vld [vmem:[#allocation7 + $0x30] sm:$0xff]  ;;  %v458_v49 = vld [vmem:[#allocation7 + $0x38] sm:$0xff]  ;;  %v946_v50 = vpack.c.bf16 %v352_v44, %v351_v43  ;;  %p1214_p4 = pnand %p1213_p2, %p1207_p7 }
  0x91   : > { %935 = vmatpush3.bf16.msra.mxu0 %v934_v20  ;;  %959 = vmatprep.subr.bf16.mxu1 %v1286_v0  ;;  %v948_v51 = vpack.c.bf16 %v370_v46, %v369_v45  ;;  %v353_v52 = vld [vmem:[#allocation5 + $0x60] sm:$0xff]  ;;  %v354_v53 = vld [vmem:[#allocation5 + $0x68] sm:$0xff]  ;;  %v371_v54 = vld [vmem:[#allocation5 + $0xf0] sm:$0xff]  ;;  %v966_v56 = vpack.c.bf16 %v458_v49, %v457_v48 }
  0x92   : > { %937 = vmatprep.subr.bf16.mxu0 %v936_v21  ;;  %v372_v55 = vld [vmem:[#allocation5 + $0xf8] sm:$0xff]  ;;  %v459_v57 = vld [vmem:[#allocation7 + $0x40] sm:$0xff]  ;;  %v460_v58 = vld [vmem:[#allocation7 + $0x48] sm:$0xff]  ;;  %v950_v59 = vpack.c.bf16 %v354_v53, %v353_v52 }
  0x93   : > { %v952_v60 = vpack.c.bf16 %v372_v55, %v371_v54  ;;  %v355_v61 = vld [vmem:[#allocation5 + $0x70] sm:$0xff]  ;;  %v356_v62 = vld [vmem:[#allocation5 + $0x78] sm:$0xff]  ;;  %v969_v63 = vpack.c.bf16 %v460_v58, %v459_v57  ;;  %v463_v6 = vld [vmem:[#allocation7 + $0x60] sm:$0xff] }
  0x94   : > { %961 = vmatpush3.bf16.msra.mxu1 %v960_v38  ;;  %v461_v1 = vld [vmem:[#allocation7 + $0x50] sm:$0xff]  ;;  %v462_v2 = vld [vmem:[#allocation7 + $0x58] sm:$0xff]  ;;  %v954_v3 = vpack.c.bf16 %v356_v62, %v355_v61  ;;  %v464_v7 = vld [vmem:[#allocation7 + $0x68] sm:$0xff] }
  0x95   : > { %939 = vmatpush3.bf16.msra.mxu0 %v938_v29  ;;  %962 = vmatprep.subr.bf16.mxu1 %v1286_v0  ;;  %v972_v4 = vpack.c.bf16 %v462_v2, %v461_v1  ;;  %v339_v5 = vld [vmem:[%s1533_s16] sm:$0xff]  ;;  %v975_v8 = vpack.c.bf16 %v464_v7, %v463_v6  ;;  %v466_v10 = vld [vmem:[#allocation7 + $0x78] sm:$0xff]  ;;  %v546_v14 = vld [vmem:[#allocation8 + $0x8] sm:$0xff]  ;;  %s650_s16 = scalar_lea.sflag [#allocation4], %s1529_s8 }
  0x96   : > { %941 = vmatprep.subr.bf16.mxu0 %v940_v33  ;;  %v465_v9 = vld [vmem:[#allocation7 + $0x70] sm:$0xff]  ;;  %v545_v13 = vld [vmem:[#allocation8] sm:$0xff]  ;;  %v548_v17 = vld [vmem:[#allocation8 + $0x18] sm:$0xff] }
  0x97   : > { %v978_v11 = vpack.c.bf16 %v466_v10, %v465_v9  ;;  %v547_v15 = vld [vmem:[#allocation8 + $0x10] sm:$0xff]  ;;  %v981_v16 = vpack.c.bf16 %v546_v14, %v545_v13  ;;  %v549_v19 = vld [vmem:[#allocation8 + $0x20] sm:$0xff]  ;;  %v550_v20 = vld [vmem:[#allocation8 + $0x28] sm:$0xff] }
  0x98   : > { %964 = vmatpush3.bf16.msra.mxu1 %v963_v47  ;;  %v984_v18 = vpack.c.bf16 %v548_v17, %v547_v15  ;;  %v987_v21 = vpack.c.bf16 %v550_v20, %v549_v19  ;;  %v551_v22 = vld [vmem:[#allocation8 + $0x30] sm:$0xff]  ;;  %v552_v23 = vld [vmem:[#allocation8 + $0x38] sm:$0xff]  ;;  %v553_v25 = vld [vmem:[#allocation8 + $0x40] sm:$0xff] }
  0x99   : > { %943 = vmatpush3.bf16.msra.mxu0 %v942_v41  ;;  %965 = vmatprep.subr.bf16.mxu1 %v1286_v0  ;;  %v990_v24 = vpack.c.bf16 %v552_v23, %v551_v22  ;;  %v554_v26 = vld [vmem:[#allocation8 + $0x48] sm:$0xff]  ;;  %v555_v28 = vld [vmem:[#allocation8 + $0x50] sm:$0xff]  ;;  %v556_v29 = vld [vmem:[#allocation8 + $0x58] sm:$0xff] }
  0x9a   : > { %945 = vmatprep.subr.bf16.mxu0 %v944_v42  ;;  %v993_v27 = vpack.c.bf16 %v554_v26, %v553_v25  ;;  %v996_v30 = vpack.c.bf16 %v556_v29, %v555_v28  ;;  %v557_v31 = vld [vmem:[#allocation8 + $0x60] sm:$0xff]  ;;  %v558_v32 = vld [vmem:[#allocation8 + $0x68] sm:$0xff]  ;;  %v559_v40 = vld [vmem:[#allocation8 + $0x70] sm:$0xff] }
  0x9b   : > { %v999_v33 = vpack.c.bf16 %v558_v32, %v557_v31  ;;  %v777_v35 = vld [vmem:[%s1625_s2] ss:$0 sm:$0xff]  ;;  %v560_v41 = vld [vmem:[#allocation8 + $0x78] sm:$0xff] }
  0x9c   : > { %967 = vmatpush3.bf16.msra.mxu1 %v966_v56  ;;  %v1002_v42 = vpack.c.bf16 %v560_v41, %v559_v40  ;;  %v778_v43 = vld [vmem:[%s1627_s4] ss:$0 sm:$0xff] }
  0x9d   : > { %947 = vmatpush3.bf16.msra.mxu0 %v946_v50  ;;  %968 = vmatprep.subr.bf16.mxu1 %v1286_v0  ;;  %v779_v47 = vld [vmem:[%s1629_s6] ss:$0 sm:$0xff] }
  0x9e   : > { %949 = vmatprep.subr.bf16.mxu0 %v948_v51 }
  0xa0   : > { %970 = vmatpush3.bf16.msra.mxu1 %v969_v63 }
  0xa1   : > { %951 = vmatpush3.bf16.msra.mxu0 %v950_v59  ;;  %971 = vmatprep.subr.bf16.mxu1 %v1286_v0 }
  0xa2   : > { %953 = vmatprep.subr.bf16.mxu0 %v952_v60 }
  0xa4   : > { %973 = vmatpush3.bf16.msra.mxu1 %v972_v4 }
  0xa5   : > { %955 = vmatpush3.bf16.msra.mxu0 %v954_v3  ;;  %974 = vmatprep.subr.bf16.mxu1 %v1286_v0 }
  0xa6   : > { %980 = vmatprep.subr.bf16.mxu0 %v1286_v0 }
  0xa8   : > { %445 = vmatmul.mubr.f32.vlgmr.msra.gmra.mrb[0].mxu0 %v339_v5  ;;  %976 = vmatpush3.bf16.msra.mxu1 %v975_v8 }
  0xa9   : > { %977 = vmatprep.subr.bf16.mxu1 %v1286_v0  ;;  %921 = vmatprep.mubr.msk.f32.mxu0 %vm1287_vm0, %v1288_v12 }
  0xaa   : > { %982 = vmatpush3.bf16.msra.mxu0 %v981_v16 }
  0xab   : > { %983 = vmatprep.subr.bf16.mxu0 %v1286_v0 }
  0xac   : > { %979 = vmatpush3.bf16.msra.mxu1 %v978_v11 }
  0xae   : > { %985 = vmatpush3.bf16.msra.mxu0 %v984_v18 }
  0xaf   : > { %986 = vmatprep.subr.bf16.mxu0 %v1286_v0 }
  0xb2   : > { %988 = vmatpush3.bf16.msra.mxu0 %v987_v21 }
  0xb3   : > { %989 = vmatprep.subr.bf16.mxu0 %v1286_v0 }
  0xb6   : > { %991 = vmatpush3.bf16.msra.mxu0 %v990_v24 }
  0xb7   : > { %992 = vmatprep.subr.bf16.mxu0 %v1286_v0 }
  0xba   : > { %994 = vmatpush3.bf16.msra.mxu0 %v993_v27 }
  0xbb   : > { %995 = vmatprep.subr.bf16.mxu0 %v1286_v0 }
  0xbe   : > { %997 = vmatpush3.bf16.msra.mxu0 %v996_v30 }
  0xbf   : > { %998 = vmatprep.subr.bf16.mxu0 %v1286_v0 }
  0xc2   : > { %1000 = vmatpush3.bf16.msra.mxu0 %v999_v33 }
  0xc3   : > { %1001 = vmatprep.subr.bf16.mxu0 %v1286_v0 }
  0xc6   : > { %1003 = vmatpush3.bf16.msra.mxu0 %v1002_v42 }
 0x17b   : > { %v817_v34 = vpop.f32.mrb[0].mxu0 }
 0x17c   : > { %v818_v36 = vpop.f32.mrb[1].mxu0 }
 0x17d   : > { %v819_v37 = vadd.f32 %v818_v36, %v817_v34 }
 0x17f   : > { %v447_v38 = vadd.f32 %v819_v37, %v777_v35 }
 0x181   : > { %v450_v39 = vmax.f32 %v447_v38, 0.0 }
 0x183   : > { %887 = vmatmul.mubr.f32.vlgmr.msra.gmra.mrb[0].mxu1 %v450_v39 }
 0x256   : > { %v540_v44 = vpop.f32.mrb[0].mxu1 }
 0x257   : > { %v541_v0 = vadd.f32 %v778_v43, %v540_v44  ;;  %v888_v45 = vpop.f32.mrb[1].mxu1 }
 0x259   : > { %v544_v46 = vmax.f32 %v541_v0, 0.0 }
 0x25b   : > { %922 = vmatmul.mubr.f32.vlgmr.msra.gmra.mrb[2].mxu0 %v544_v46 }
 0x32e   : > { %v634_v48 = vpop.f32.mrb[2].mxu0 }
 0x32f   : > { %v635_v49 = vadd.f32 %v779_v47, %v634_v48  ;;  %v923_v50 = vpop.f32.mrb[3].mxu0 }
 0x331   : > { %638 = vmax.xlane.f32.xlu0 %v635_v49 }
 0x3be   : > { %v639_v51 = vpop.xlane.xlu0 %638 }
 0x3bf   : > { %v640_v52 = vsub.f32 %v635_v49, %v639_v51 }
 0x3c1   : > { %v641_v53 = vmul.f32 1.442695, %v640_v52 }
 0x3c3   : > { %1086 = vpow2.f32 %v641_v53 }
 0x3cd   : > { %v1087_v54 = vpop.eup %1086 }
 0x3ce   : > { %643 = vadd.xlane.f32.xlu0 %v1087_v54 }
 0x45b   : > { %v644_v55 = vpop.xlane.xlu0 %643 }
 0x45c   : > { %1088 = vlog2.f32 %v644_v55 }
 0x466   : > { %v1089_v56 = vpop.eup %1088 }
 0x467   : > { %v646_v57 = vmul.f32 0.6931472, %v1089_v56 }
 0x469   : > { %v647_v58 = vsub.f32 %v640_v52, %v646_v57 }
 0x46b   : > { %648 = vst [vmem:[%s338_s15] sm:$0xff] %v647_v58 }
 0x46c   : > { %1217 = shalt.err (!%p1214_p4)
}
 0x46d   : > { %s1218_s8 = scalar_lea.hbm %s1579_s21, 128  ;;  %s1222_s14 = scalar_lea.hbm %s1630_s7, 256 }
 0x46e   : > { %p1219_p0 = scmp.ne.s32.totalorder %s1579_s21, %s1218_s8  ;;  %p1223_p8 = scmp.lt.u32.totalorder %s1579_s21, %s1630_s7 }
 0x46f   : > { %p1224_p13 = scmp.lt.u32.totalorder %s1222_s14, %s1218_s8  ;;  %p1226_p10 = scmp.lt.u32.totalorder %s1218_s8, %s1579_s21 }
 0x470   : > { %p1220_p9 = pnand %p1219_p0, %p1484_p5 }
 0x471   : > { %p1225_p6 = por %p1224_p13, %p1223_p8 }
 0x472   : > { %p1221_p11 = pneg %p1220_p9 }
 0x473   : > { %p1227_p3 = por %p1226_p10, %p1225_p6 }
 0x475   : > { %p1228_p7 = pnand %p1227_p3, %p1221_p11 }
 0x477   : > { %1231 = shalt.err (!%p1228_p7)
}
 0x478   : > { %1018 = dma.vmem_to_hbm [thread:$0]  (%p1484_p5), %s1581_s29, 128, %s1579_s21, %s650_s16  }
 0x479 PF: > { %s1650_s15 = sld [smem:[#allocation15_spill]]  ;;  %s675_s12 = sand.u32 1, %s1266_s24  }
 0x47a   : > { %p1652_p1 = scmp.ge.s32.totalorder %s1278_s27, 2  ;;  %s676_s17 = scalar_lea.sflag [#allocation4], %s675_s12 }
 0x47f   : > { %p1651_p12 = scmp.ne.s32.totalorder %s1650_s15, 0 }
 0x481   : > { %p1035_p2 = pnand %p1652_p1, %p1651_p12 }
 0x483   : > { %1261 = dma.done.wait (!%p1035_p2), %s676_s17, 128  }
 0x484   : > { %1263 = vsyncadd (!%p1035_p2), %s676_s17, 4294967168  ;;  %p22_p4 = scmp.ge.s32.totalorder %s1470_s22, 4   ;;  %s1653_s24 = smov %s1270_s25 }
 0x485   : > { %s1654_s25 = smov %s1274_s26  ;;  %s1655_s26 = smov %s1480_s18 }
 0x486   : > { %s1656_s27 = smov %s1470_s22  ;;  %24 = sbr.rel (!%p22_p4) target bundleno = 7 (0x7), region = 105 }
 0x48d   :  { %681 = vsyncpa [#allocation3], 1 }
 0x48e   :  { %683 = vsyncpa [#allocation3 + $0x1], 1 }
 0x48f   :  { %684 = vsyncpa [#allocation6], 1 }
 0x490   :  { %685 = vsyncpa [#allocation9], 1 }
 0x491   :  { %686 = vsyncpa [#allocation4], 1 }
 0x492   :  { %688 = vsyncpa [#allocation4 + $0x1], 1 }

</bundles_post_ra>
